<compile_context>
chip_gen: v6e
topology: v6e:2x2x1
jax: 0.10.0
libtpu: 0.0.40
codegen_flags: <defaults>
</compile_context>

<pallas_src>
import functools
import math

import jax
import jax.numpy as jnp
from jax.experimental import pallas as pl
from jax.experimental.pallas import tpu as pltpu


def _spatial_attn_kernel(x_ref, wd_ref, params_ref, b_ref, o_ref, *,
                         normalize_attn):
    # x_ref:      (C, T)   compute dtype (bf16 or f32), lane-dense tile
    # wd_ref:     (A, C)   compute dtype, BN scale already folded in
    # params_ref: (A, 2)   f32, [:, 0] = BN shift, [:, 1] = phi weight
    # b_ref:      (1, 1)   f32 in SMEM (phi bias)
    # o_ref:      (1, T)
    #
    # down 1x1 conv == channel matmul; f32 accumulation on the MXU.
    c = jnp.dot(wd_ref[...], x_ref[...],
                preferred_element_type=jnp.float32)          # (A, T) f32

    p = params_ref[...]                                       # (A, 2) f32
    shift = p[:, 0:1]                                         # (A, 1)
    wp = p[:, 1:2]                                            # (A, 1)

    # BN (scale folded into the weight) + ReLU, in f32.
    c = jnp.maximum(c + shift, 0.0)

    # phi 1x1 conv A -> 1 with bias: weighted sublane reduce (XLU, free slot
    # at A=8) + scalar bias from SMEM.
    logits = jnp.sum(wp * c, axis=0, keepdims=True) + b_ref[0, 0]   # (1, T)

    if normalize_attn:
        # Block == one sample's H*W positions -> softmax over this block.
        # TODO(synk): for very large H*W (v7x 64 MiB VMEM), switch to a tiled
        # two-pass / online softmax over an 'arbitrary' inner HW axis.
        m = jnp.max(logits, axis=-1, keepdims=True)
        e = jnp.exp(logits - m)
        a = e / jnp.sum(e, axis=-1, keepdims=True)
    else:
        a = jax.nn.sigmoid(logits)

    o_ref[...] = a.astype(o_ref.dtype)


def _pick_lane_tile(L, *, min_tiles=2, max_tile=8192):
    """Largest multiple-of-128 divisor of L (capped) that yields >= min_tiles
    grid steps; falls back to a single full-axis block."""
    if L % 128 != 0:
        return L
    best = L
    t = 128
    while t <= min(L, max_tile):
        if L % t == 0 and (L // t) >= min_tiles:
            best = t
        t += 128
    return best


def spatial_attention_block(x, w_down, bn_gamma, bn_beta, bn_mean, bn_var,
                            w_phi, b_phi, *, normalize_attn=False, eps=1e-5,
                            compute_dtype=jnp.bfloat16, max_lane_tile=8192):
    """x: (N, C, H, W) float32. Returns attention map (N, 1, H, W)
    (or the module's `.view(N, 1, W, H)` quirk when normalize_attn=True)."""
    N, C, H, W = x.shape
    A = w_down.shape[0]
    HW = H * W
    L = N * HW

    # ---- Parameter prep (tiny, f32, done once outside the kernel) ----
    inv_std = (bn_gamma / jnp.sqrt(bn_var + eps)).astype(jnp.float32)
    # Fold BN scale into the down-conv weight: scale*(W@x)+shift == (scale*W)@x+shift
    wd = w_down.reshape(A, C).astype(jnp.float32) * inv_std[:, None]
    shift = (bn_beta - bn_mean * inv_std).astype(jnp.float32)
    wp = w_phi.reshape(A).astype(jnp.float32)
    params = jnp.stack([shift, wp], axis=1)                  # (A, 2) f32
    b = b_phi.reshape(1, 1).astype(jnp.float32)              # SMEM scalar

    # ---- Layout: NCHW -> (C, N*HW): channels on sublanes, fused batch+spatial
    # on the lane axis (one lane-dense matmul, lane-dense output slab). ----
    x_flat = jnp.transpose(x.reshape(N, C, HW), (1, 0, 2)).reshape(C, L)
    x_flat = x_flat.astype(compute_dtype)
    wd = wd.astype(compute_dtype)

    if normalize_attn:
        # Softmax normalizes per sample over H*W -> lane tiles must align with
        # sample boundaries: one grid step per sample.
        if N > 1 and HW % 128 != 0:
            raise NotImplementedError(
                "normalize_attn=True with N > 1 requires H*W % 128 == 0")
        lane_tile = HW
        grid = (N,)
    else:
        lane_tile = _pick_lane_tile(L, max_tile=max_lane_tile)
        grid = (L // lane_tile,)

    kernel = functools.partial(_spatial_attn_kernel,
                               normalize_attn=normalize_attn)

    out = pl.pallas_call(
        kernel,
        out_shape=jax.ShapeDtypeStruct((1, L), x.dtype),
        grid_spec=pltpu.PrefetchScalarGridSpec(
            num_scalar_prefetch=0,
            grid=grid,
            in_specs=[
                pl.BlockSpec((C, lane_tile), lambda i: (0, i)),    # x tile
                pl.BlockSpec((A, C), lambda i: (0, 0)),            # folded weight
                pl.BlockSpec((A, 2), lambda i: (0, 0)),            # shift | phi w
                pl.BlockSpec(memory_space=pltpu.MemorySpace.SMEM), # phi bias
            ],
            out_specs=pl.BlockSpec((1, lane_tile), lambda i: (0, i)),
        ),
        compiler_params=pltpu.CompilerParams(
            dimension_semantics=("parallel",),
        ),
        # NOTE: blocks here are tiny; at realistic (C, HW) sizes budget
        # 2 * C * lane_tile * itemsize well under scoped VMEM (v7x: 64 MiB
        # physical) and set vmem_limit_bytes explicitly.
    )(x_flat, wd, params, b)

    if normalize_attn:
        # Mirrors the PyTorch `.view(N, 1, W, H)` quirk (reshape, no transpose).
        return out.reshape(N, 1, W, H)
    return out.reshape(N, 1, H, W)


def _reference(x, w_down, bn_gamma, bn_beta, bn_mean, bn_var, w_phi, b_phi,
               *, normalize_attn=False, eps=1e-5):
    # Pure-JAX mirror of the PyTorch forward (BatchNorm in eval mode).
    N, C, H, W = x.shape
    A = w_down.shape[0]
    c = jnp.einsum('nchw,ac->nahw', x, w_down.reshape(A, C))
    scale = (bn_gamma / jnp.sqrt(bn_var + eps))[None, :, None, None]
    c = (c - bn_mean[None, :, None, None]) * scale + bn_beta[None, :, None, None]
    c = jnp.maximum(c, 0.0)
    logits = jnp.einsum('nahw,a->nhw', c, w_phi.reshape(A)) + b_phi.reshape(())
    logits = logits[:, None]                                  # (N, 1, H, W)
    if normalize_attn:
        return jax.nn.softmax(logits.reshape(N, 1, -1), axis=2).reshape(N, 1, W, H)
    return jax.nn.sigmoid(logits)


if __name__ == "__main__":
    # Small shapes consistent with the module.
    N, C, H, W = 2, 4, 16, 16          # x: NCHW
    A = 8                              # attn_features
    up_factor = 2                      # stored by the module, unused in forward

    key = jax.random.PRNGKey(0)
    kx, kd, kp, kb, k1, k2, k3, k4 = jax.random.split(key, 8)

    x = jax.random.normal(kx, (N, C, H, W), dtype=jnp.float32)

    # Conv init as in the module: weight ~ N(0, sqrt(2 / (kH*kW*out_ch)))
    w_down = jax.random.normal(kd, (A, C, 1, 1), jnp.float32) * math.sqrt(2.0 / A)
    w_phi = jax.random.normal(kp, (1, A, 1, 1), jnp.float32) * math.sqrt(2.0 / 1)
    b_phi = jax.random.uniform(kb, (1,), jnp.float32,
                               minval=-1.0 / math.sqrt(A),
                               maxval=1.0 / math.sqrt(A))
    # Non-trivial BN running stats (eval mode) to exercise the BN fold.
    bn_gamma = 1.0 + 0.1 * jax.random.normal(k1, (A,), jnp.float32)
    bn_beta = 0.1 * jax.random.normal(k2, (A,), jnp.float32)
    bn_mean = 0.2 * jax.random.normal(k3, (A,), jnp.float32)
    bn_var = jnp.abs(1.0 + 0.2 * jax.random.normal(k4, (A,), jnp.float32))

    for normalize_attn in (False, True):
        ref = _reference(x, w_down, bn_gamma, bn_beta, bn_mean, bn_var,
                         w_phi, b_phi, normalize_attn=normalize_attn)

        # Exact-semantics check: f32 compute path.
        out_f32 = spatial_attention_block(
            x, w_down, bn_gamma, bn_beta, bn_mean, bn_var, w_phi, b_phi,
            normalize_attn=normalize_attn, compute_dtype=jnp.float32)
        out_f32 = jax.block_until_ready(out_f32)
        assert out_f32.shape == ref.shape, (out_f32.shape, ref.shape)
        assert jnp.allclose(out_f32, ref, atol=2e-5, rtol=2e-5), \
            float(jnp.max(jnp.abs(out_f32 - ref)))

        # Fast path (default): bf16 matmul inputs, f32 accumulation/epilogue.
        out_bf16 = spatial_attention_block(
            x, w_down, bn_gamma, bn_beta, bn_mean, bn_var, w_phi, b_phi,
            normalize_attn=normalize_attn)
        out_bf16 = jax.block_until_ready(out_bf16)
        assert out_bf16.shape == ref.shape, (out_bf16.shape, ref.shape)
        assert jnp.allclose(out_bf16, ref, atol=5e-2, rtol=5e-2), \
            float(jnp.max(jnp.abs(out_bf16 - ref)))

    print("KERNEL_OK")
</pallas_src>

<mosaic_0001>
module attributes {stable_mosaic.version = 11 : i64} {
  func.func @_spatial_attn_kernel(%arg0: i32, %arg1: memref<4x256xf32, #tpu.memory_space<vmem>>, %arg2: memref<8x4xf32, #tpu.memory_space<vmem>>, %arg3: memref<8x2xf32, #tpu.memory_space<vmem>>, %arg4: memref<1x1xf32, #tpu.memory_space<smem>>, %arg5: memref<1x256xf32, #tpu.memory_space<vmem>>) attributes {dimension_semantics = [#tpu.dimension_semantics<parallel>], iteration_bounds = array<i64: 2>, scalar_prefetch = 0 : i64, scratch_operands = 0 : i64, tpu.core_type = #tpu.core_type<tc>, window_params = [{transform_indices = @transform_0, window_bounds = array<i64: 4, 256>}, {pipeline_mode = #tpu.pipeline_mode<synchronous>, transform_indices = @transform_1, window_bounds = array<i64: 8, 4>}, {pipeline_mode = #tpu.pipeline_mode<synchronous>, transform_indices = @transform_2, window_bounds = array<i64: 8, 2>}, {transform_indices = @transform_3, window_bounds = array<i64: 1, 1>}, {transform_indices = @transform_4, window_bounds = array<i64: 1, 256>}]} {
    %c0 = arith.constant 0 : index
    %c0_0 = arith.constant 0 : index
    %0 = vector.load %arg2[%c0, %c0_0] : memref<8x4xf32, #tpu.memory_space<vmem>>, vector<8x4xf32>
    %c0_1 = arith.constant 0 : index
    %c0_2 = arith.constant 0 : index
    %1 = vector.load %arg1[%c0_1, %c0_2] : memref<4x256xf32, #tpu.memory_space<vmem>>, vector<4x256xf32>
    %cst = arith.constant dense<0.000000e+00> : vector<8x256xf32>
    %2 = tpu.matmul %0, %1, %cst {dimension_numbers = #tpu.dot_dimension_numbers<[1], [0], [0], [1], [0, 0, 1, 1], [], []>} : vector<8x4xf32>, vector<4x256xf32>, vector<8x256xf32> -> vector<8x256xf32>
    %c0_3 = arith.constant 0 : index
    %c0_4 = arith.constant 0 : index
    %3 = vector.load %arg3[%c0_3, %c0_4] : memref<8x2xf32, #tpu.memory_space<vmem>>, vector<8x2xf32>
    %4 = vector.extract_strided_slice %3 {offsets = [0, 0], sizes = [8, 1], strides = [1, 1]} : vector<8x2xf32> to vector<8x1xf32>
    %5 = vector.extract_strided_slice %3 {offsets = [0, 1], sizes = [8, 1], strides = [1, 1]} : vector<8x2xf32> to vector<8x1xf32>
    %6 = vector.broadcast %4 : vector<8x1xf32> to vector<8x256xf32>
    %7 = arith.addf %2, %6 : vector<8x256xf32>
    %cst_5 = arith.constant 0.000000e+00 : f32
    %8 = vector.broadcast %cst_5 : f32 to vector<8x256xf32>
    %9 = arith.maximumf %7, %8 : vector<8x256xf32>
    %10 = vector.broadcast %5 : vector<8x1xf32> to vector<8x256xf32>
    %11 = arith.mulf %10, %9 : vector<8x256xf32>
    %cst_6 = arith.constant dense<0.000000e+00> : vector<256xf32>
    %12 = vector.multi_reduction <add>, %11, %cst_6 [0] : vector<8x256xf32> to vector<256xf32>
    %13 = vector.shape_cast %12 : vector<256xf32> to vector<1x256xf32>
    %c0_7 = arith.constant 0 : index
    %c0_8 = arith.constant 0 : index
    %14 = memref.load %arg4[%c0_7, %c0_8] : memref<1x1xf32, #tpu.memory_space<smem>>
    %15 = vector.broadcast %14 : f32 to vector<1x256xf32>
    %16 = arith.addf %13, %15 : vector<1x256xf32>
    %17 = arith.negf %16 : vector<1x256xf32>
    %18 = math.exp %17 : vector<1x256xf32>
    %cst_9 = arith.constant 1.000000e+00 : f32
    %19 = vector.broadcast %cst_9 : f32 to vector<1x256xf32>
    %20 = arith.addf %19, %18 : vector<1x256xf32>
    %21 = arith.divf %19, %20 : vector<1x256xf32>
    %c0_10 = arith.constant 0 : index
    %c0_11 = arith.constant 0 : index
    %22 = vector.load %arg5[%c0_10, %c0_11] : memref<1x256xf32, #tpu.memory_space<vmem>>, vector<1x256xf32>
    tpu.vector_store %arg5[%c0_10, %c0_11], %21 {strides = array<i32>} : memref<1x256xf32, #tpu.memory_space<vmem>>, vector<1x256xf32>,
    return
  }
  func.func @transform_0(%arg0: i32) -> (i32, i32) {
    %c0_i32 = arith.constant 0 : i32
    %c0_i32_0 = arith.constant 0 : i32
    return %c0_i32, %arg0 : i32, i32
  }
  func.func @transform_1(%arg0: i32) -> (i32, i32) {
    %c0_i32 = arith.constant 0 : i32
    %c0_i32_0 = arith.constant 0 : i32
    %c0_i32_1 = arith.constant 0 : i32
    return %c0_i32, %c0_i32_0 : i32, i32
  }
  func.func @transform_2(%arg0: i32) -> (i32, i32) {
    %c0_i32 = arith.constant 0 : i32
    %c0_i32_0 = arith.constant 0 : i32
    %c0_i32_1 = arith.constant 0 : i32
    return %c0_i32, %c0_i32_0 : i32, i32
  }
  func.func @transform_3(%arg0: i32) -> (i32, i32) {
    %c0_i32 = arith.constant 0 : i32
    %c0_i32_0 = arith.constant 0 : i32
    %c0_i32_1 = arith.constant 0 : i32
    return %c0_i32, %c0_i32_0 : i32, i32
  }
  func.func @transform_4(%arg0: i32) -> (i32, i32) {
    %c0_i32 = arith.constant 0 : i32
    %c0_i32_0 = arith.constant 0 : i32
    return %c0_i32, %arg0 : i32, i32
  }
}

</mosaic_0001>

<bundles_post_ra>
// kernel: tpu_custom_call.1
= control target key start
LH: loop header
LB: loop body
LE: loop exit
PB: predicated region body
PF: predicated region fallthrough
CT: control target
= control target key end

     0   :  { %s682_s0 = inlined_call_operand.vmem [shape: f32[4,512], index: 0, kind: input, shape index: {}]   ;;  %s683_s1 = inlined_call_operand.vmem [shape: f32[8,4], index: 1, kind: input, shape index: {}]   ;;  %s684_s2 = inlined_call_operand.vmem [shape: f32[8,2], index: 2, kind: input, shape index: {}]   ;;  %s685_s3 = inlined_call_operand.<no memory space> [shape: f32[1,1], index: 3, kind: input, shape index: {}]   ;;  %s686_s4 = inlined_call_operand.hbm [shape: f32[1,512], index: 4, kind: output, shape index: {}]  }
   0x1   :  { %9 = sst [smem:[#allocation2]] %s685_s3 }
   0x2   :  { %10 = vsyncpa [#allocation4], 0 }
   0x3   :  { %12 = vsyncpa [#allocation4 + $0x1], 0  ;;  %s590_s17 = smov 0   ;;  %s592_s18 = smov 0  }
   0x4   :  { %s594_s19 = smov 0   ;;  %s596_s20 = smov 0  }
   0x5 LB: > { %s611_s3 = sadd.s32 4294967295, %s555_s20   ;;  %s423_s21 = sadd.s32 4294967294, %s555_s20   ;;  %s555_s20 = sphi %s596_s20, %s692_s20   ;;  %s551_s19 = sphi %s594_s19, %s691_s19   ;;  %s547_s18 = sphi %s592_s18, %s690_s18   ;;  %s543_s17 = sphi %s590_s17, %s689_s17  }
   0x6   : > { %s615_s22 = sadd.s32 1, %s555_s20   ;;  %s114_s23 = sadd.s32 1, %s551_s19 }
   0x7   : > { %s111_s24 = ssub.s32 %s555_s20, %s615_s22  ;;  %p124_p0 = scmp.ne.s32.totalorder %s551_s19, %s547_s18 }
   0x8   : > { %p112_p1 = scmp.eq.s32.totalorder %s111_s24, 0  ;;  %p125_p2 = scmp.eq.s32.totalorder %s611_s3, 1 }
   0x9   : > { %p130_p3 = scmp.ne.s32.totalorder %s547_s18, %s543_s17  ;;  %p131_p4 = scmp.eq.s32.totalorder %s423_s21, 1 }
   0xa   : > { %s626_s25 = scalar_select %p112_p1, %s551_s19, %s114_s23  }
   0xb   : > { %p628_p5 = por %p125_p2, %p124_p0  ;;  %p632_p6 = por %p131_p4, %p130_p3 }
   0xc   : > { %p426_p7 = scmp.ge.s32.totalorder %s555_s20, 1  ;;  %p167_p8 = scmp.lt.s32.totalorder %s555_s20, 3 }
   0xe   : > { %p168_p9 = pnand %p426_p7, %p167_p8 }
   0xf   : > { %s428_s28 = sshll.u32 (!%p168_p9), %s611_s3, 1  ;;  %s310_s11 = sld [smem:[#allocation2]] (!%p168_p9) }
  0x10   : > { %171 = sbr.rel (%p168_p9) target bundleno = 295 (0x127), region = 36  ;;  %p194_p10 = scmp.lt.s32.totalorder (!%p168_p9), %s428_s28, 3 }
  0x11   : > { %s190_s12 = sand.u32 (!%p168_p9), 1, %s547_s18   ;;  %s440_s14 = sshll.u32 (!%p168_p9), %s611_s3, 5 }
  0x12   : > { %s427_s13 = sshll.u32 (!%p168_p9), %s190_s12, 1  ;;  %s362_s24 = scalar_lea.hbm (!%p168_p9), %s686_s4, %s440_s14 }
  0x13   : > { %s192_s15 = scalar_lea.vmem (!%p168_p9), [#allocation3], %s427_s13  ;;  %s561_s30 = smov (!%p168_p9), [#allocation3]  }
  0x14   : > { %s364_s16 = sshll.u32 (!%p168_p9), %s192_s15, 4  ;;  %s365_s16 = int_to_ptr.vmem [resolvable:$true] %s364_s16 }
  0x15   : > { %v557_v0 = vmov 0.0   ;;  %v558_v1 = vmov 0   ;;  %v202_v2 = vld [vmem:[%s684_s2] sm:$0xff]  ;;  %s694_s28 = smov (!%p194_p10, %s428_s28), 3  ;;  %v559_v3 = vmov 1   ;;  %vm214_vm0 = vcmask 1043456  }
  0x16   : > { %283 = vmatprep.mubr.f32.mxu0 %v557_v0  ;;  %484 = vset.pattern.permute.xlu0 %v558_v1  ;;  %s429_s5 = sshll.u32 %s694_s28, 2  ;;  %v200_v6 = vld [vmem:[%s683_s1] sm:$0xff]  ;;  %vm210_vm1 = vcmask 31744   ;;  %v311_v26 = vstv %s310_s11  ;;  %v560_v38 = vmov 1966171168   ;;  %v332_v40 = vlaneseq  ;;  %s350_s28 = scalar_lea.sflag [#allocation4], %s190_s12 }
  0x17   : > { %205 = vperm.xlu0 %484, %v202_v2   ;;  %s197_s8 = scalar_lea.vmem %s682_s0, %s429_s5  ;;  %v330_v39 = vunpack.c.l.s4 %v560_v38  ;;  %s495_s29 = scalar_lea.vmem %s365_s16, 32 }
  0x18   : > { %v201_v4 = vld [vmem:[%s197_s8] sm:$0xff]  ;;  %v333_v42 = vshrl.u32 %v332_v40, 7  ;;  %vm346_vm2 = vcmp.lt.s32.totalorder %v332_v40, 256  ;;  %p496_p11 = scmp.ne.s32.totalorder %s365_s16, %s495_s29  ;;  %s499_s5 = sshll.u32 %s561_s30, 4  ;;  %s500_s5 = int_to_ptr.vmem [resolvable:$false] %s499_s5 }
  0x19   : > { %v209_v5 = vcombine.high %v201_v4, %v201_v4  ;;  %v331_v41 = vunpack.c.0.s8 %v330_v39  ;;  %s501_s3 = scalar_lea.vmem %s500_s5, 64  ;;  %p502_p0 = scmp.lt.s32.totalorder %s365_s16, %s500_s5 }
  0x1a   : > { %p497_p12 = pnand %p496_p11, %p628_p5  ;;  %p503_p1 = scmp.lt.s32.totalorder %s501_s3, %s495_s29 }
  0x1b   : > { %485 = vset.pattern.permute.xlu0 %v559_v3  ;;  %430 = vmatprep.subr.msk.mxu0 %vm214_vm0, %v209_v5  ;;  %v334_v44 = vsub.s32 %v331_v41, %v333_v42 }
  0x1c   : > { %293 = vperm.xlu0 %485, %v202_v2   ;;  %431 = vmatpush1.msk.msra.mxu0 %vm214_vm0, %v201_v4  ;;  %p498_p13 = pneg %p497_p12  ;;  %p504_p2 = por %p503_p1, %p502_p0 }
  0x1d   : > { %432 = vmatmul.mubr.msk.f32.vlgmr.msra.gmra.mxu0 %vm210_vm1, %v200_v6 }
  0x1e   : > { %p505_p3 = pnand %p504_p2, %p498_p13 }
  0x92   : > { %v206_v7 = vpop.permute.xlu0 %205 }
  0x97   : > { %v294_v11 = vpop.permute.xlu0 %293 }
  0xdd   : > { %v285_v8 = vpop.f32.mrf.mxu0 }
  0xde   : > { %v286_v9 = vadd.f32 %v285_v8, %v206_v7 }
  0xdf   : > { %v287_v10 = vpop.f32.mrf.mxu0 }
  0xe0   : > { %v290_v12 = vmax.f32 %v286_v9, 0.0  ;;  %v288_v13 = vadd.f32 %v287_v10, %v206_v7 }
  0xe2   : > { %v291_v14 = vmax.f32 %v288_v13, 0.0  ;;  %v296_v15 = vmul.f32 %v294_v11, %v290_v12 }
  0xe4   : > { %v297_v16 = vmul.f32 %v294_v11, %v291_v14  ;;  %v298_v17 = vrot.slane %v296_v15, 4 }
  0xe6   : > { %v299_v18 = vadd.f32 %v298_v17, %v296_v15  ;;  %v304_v19 = vrot.slane %v297_v16, 4 }
  0xe8   : > { %v300_v20 = vrot.slane %v299_v18, 2  ;;  %v305_v21 = vadd.f32 %v304_v19, %v297_v16 }
  0xea   : > { %v301_v22 = vadd.f32 %v300_v20, %v299_v18  ;;  %v306_v23 = vrot.slane %v305_v21, 2 }
  0xec   : > { %v302_v24 = vrot.slane %v301_v22, 1  ;;  %v307_v25 = vadd.f32 %v306_v23, %v305_v21 }
  0xee   : > { %v303_v27 = vadd.f32 %v302_v24, %v301_v22  ;;  %v308_v28 = vrot.slane %v307_v25, 1 }
  0xf0   : > { %v309_v29 = vadd.f32 %v308_v28, %v307_v25  ;;  %v312_v30 = vadd.f32 %v311_v26, %v303_v27 }
  0xf2   : > { %v313_v31 = vadd.f32 %v311_v26, %v309_v29  ;;  %v433_v32 = vmul.f32 -1.442695, %v312_v30 }
  0xf4   : > { %487 = vpow2.f32 %v433_v32  ;;  %v434_v33 = vmul.f32 -1.442695, %v313_v31 }
  0xf6   : > { %489 = vpow2.f32 %v434_v33 }
 0x101   : > { %v488_v34 = vpop.eup %487 }
 0x102   : > { %v320_v35 = vadd.f32 1.0, %v488_v34 }
 0x103   : > { %v490_v36 = vpop.eup %489 }
 0x104   : > { %v321_v37 = vadd.f32 1.0, %v490_v36  ;;  %491 = vrcp.f32 %v320_v35 }
 0x106   : > { %493 = vrcp.f32 %v321_v37 }
 0x111   : > { %v492_v43 = vpop.eup %491 }
 0x113   : > { %v494_v45 = vpop.eup %493 }
 0x114   : > { %v328_v46 = vcombine.low %v492_v43, %v494_v45 }
 0x116   : > { %v335_v47 = vrot.slane %v328_v46, %v334_v44 }
 0x118   : > { %v342_v48 = vrot.slane %v335_v47, %v334_v44 }
 0x11a   : > { %348 = vst.msk [vmem:[%s192_s15] sm:$0x3] %vm346_vm2, %v342_v48 }
 0x11b   : > { %508 = shalt.err (!%p505_p3)
}
 0x11c   : > { %s509_s6 = scalar_lea.hbm %s362_s24, 32  ;;  %s513_s9 = scalar_lea.hbm %s686_s4, 64 }
 0x11d   : > { %p510_p4 = scmp.ne.s32.totalorder %s362_s24, %s509_s6  ;;  %p514_p9 = scmp.lt.s32.totalorder %s362_s24, %s686_s4 }
 0x11e   : > { %p515_p10 = scmp.lt.s32.totalorder %s513_s9, %s509_s6 }
 0x11f   : > { %p511_p7 = pnand %p510_p4, %p628_p5 }
 0x120   : > { %p516_p11 = por %p515_p10, %p514_p9 }
 0x121   : > { %p512_p8 = pneg %p511_p7 }
 0x123   : > { %p517_p12 = pnand %p516_p11, %p512_p8 }
 0x125   : > { %520 = shalt.err (!%p517_p12)
}
 0x126   : > { %441 = dma.vmem_to_hbm [thread:$0]  (%p628_p5), %s365_s16, 32, %s362_s24, %s350_s28  }
 0x127 PF: > { %p447_p13 = scmp.ge.s32.totalorder %s555_s20, 2  ;;  %s376_s12 = sand.u32 1, %s543_s17  }
 0x128   : > { %s377_s13 = scalar_lea.sflag [#allocation4], %s376_s12 }
 0x129   : > { %p444_p0 = pnand %p447_p13, %p632_p6 }
 0x12b   : > { %p445_p1 = pneg %p444_p0 }
 0x12d   : > { %538 = dma.done.wait (%p445_p1), %s377_s13, 32  }
 0x12e   : > { %540 = vsyncadd (%p445_p1), %s377_s13, 4294967264  ;;  %p15_p2 = scmp.ge.s32.totalorder %s615_s22, 4   ;;  %s689_s17 = smov %s547_s18 }
 0x12f   : > { %s690_s18 = smov %s551_s19  ;;  %s691_s19 = smov %s626_s25 }
 0x130   : > { %s692_s20 = smov %s615_s22  ;;  %17 = sbr.rel (!%p15_p2) target bundleno = 5 (0x5), region = 71 }
 0x135   :  { %382 = vsyncpa [#allocation4], 1 }
 0x136   :  { %384 = vsyncpa [#allocation4 + $0x1], 1 }

</bundles_post_ra>
